<compile_context>
chip_gen: v6e
topology: v6e:2x2x1
jax: 0.10.0
libtpu: 0.0.40
codegen_flags: <defaults>
</compile_context>

<pallas_src>
import functools

import jax
import jax.numpy as jnp
from jax.experimental import pallas as pl
from jax.experimental.pallas import tpu as pltpu


LANES = 128
MAX_WIDTH = 16384          # widest last-dim we keep un-flattened


def _cdiv(a, b):
    return -(-a // b)


def _round_up(a, b):
    return _cdiv(a, b) * b


@functools.lru_cache(maxsize=1)
def _tpu_config():
    """(splits, core_parallel, tile_bytes, vmem_limit) for the local chip."""
    kind = ""
    try:
        kind = (getattr(jax.devices()[0], "device_kind", "") or "").lower()
    except Exception:
        pass
    if "v7" in kind or "7x" in kind:
        # v7x: 2 TensorCores, 3.2 TB/s HBM, 64 MiB physical VMEM per TC.
        return dict(splits=2, core_parallel=True,
                    tile_bytes=6 << 20, vmem_limit=40 << 20)
    # v5e / v6e (single TensorCore, 128 MiB VMEM) and unknown platforms.
    return dict(splits=1, core_parallel=False,
                tile_bytes=4 << 20, vmem_limit=64 << 20)


def _choose_block_rows(M, W, itemsize, tile_bytes):
    """Rows per block: ~tile_bytes of VMEM, multiple of 8, <= round_up(M, 8)."""
    w_pad = _round_up(W, LANES)                     # lanes are padded in VMEM
    rows = max(8, tile_bytes // max(w_pad * itemsize, 1))
    rows = (rows // 8) * 8
    return min(rows, _round_up(M, 8))


def _make_mse_kernel(M, B, W, steps, need_mask):
    """sum((x - t)^2) accumulated into an (8, W) f32 scratch.

    Grid = (splits, steps): axis 0 shards the reduction across TensorCores on
    v7x (CORE_PARALLEL), axis 1 is the 'arbitrary' reduction over row-blocks.
    Each split writes its partial sum into its own (1, 1, 128) output block.
    """
    G = B // 8                                      # B is always a multiple of 8

    def group_sum(d2):
        if G == 1:
            return d2
        # Split the sublane dim into groups of 8 and add groups together:
        # layout-preserving reshape + pure-VPU elementwise adds.
        return jnp.sum(d2.reshape(G, 8, W), axis=0)

    def kernel(x_ref, t_ref, out_ref, acc_ref):
        c = pl.program_id(0)                        # core-split index
        i = pl.program_id(1)                        # reduction step

        @pl.when(i == 0)
        def _init():
            acc_ref[...] = jnp.zeros_like(acc_ref)

        d = x_ref[...].astype(jnp.float32) - t_ref[...].astype(jnp.float32)
        d2 = d * d

        if need_mask:
            g = c * steps + i                       # logical (unclamped) block index
            is_full = (g + 1) * B <= M              # block entirely inside the array

            @pl.when(is_full)
            def _accumulate_fast():
                acc_ref[...] += group_sum(d2)

            @pl.when(jnp.logical_not(is_full))
            def _accumulate_ragged():
                # Ragged last block and/or fully-out-of-range clamped block of
                # the idle split: zero the rows beyond the logical row count M.
                row0 = g * B
                row_ids = jax.lax.broadcasted_iota(jnp.int32, (B, 1), 0) + row0
                acc_ref[...] += group_sum(jnp.where(row_ids < M, d2, 0.0))
        else:
            acc_ref[...] += group_sum(d2)

        @pl.when(i == steps - 1)
        def _finalize():
            total = jnp.sum(acc_ref[...])           # single small XLU reduction
            out_ref[...] = jnp.broadcast_to(total, (1, 1, LANES))

    return kernel


@functools.lru_cache(maxsize=None)
def _build_mse_partial_fn(M, W, itemsize):
    """Build (and cache) the pallas_call for an (M, W) slab of given itemsize."""
    cfg = _tpu_config()
    B = _choose_block_rows(M, W, itemsize, cfg["tile_bytes"])
    blocks = _cdiv(M, B)
    splits = min(cfg["splits"], blocks)             # never split below one block/core
    steps = _cdiv(blocks, splits)
    last_block = blocks - 1
    need_mask = (splits * steps * B) != M

    def in_map(c, i):
        # Clamp so we never request a block whose origin is past the array end;
        # logically-out-of-range blocks are fully masked inside the kernel.
        return (jnp.minimum(c * steps + i, last_block), 0)

    if splits > 1 and cfg["core_parallel"]:
        dims = (pltpu.CORE_PARALLEL, pltpu.ARBITRARY)   # real per-TC sharding (v7x)
    else:
        dims = ("arbitrary", "arbitrary")

    call = pl.pallas_call(
        _make_mse_kernel(M, B, W, steps, need_mask),
        out_shape=jax.ShapeDtypeStruct((splits, 1, LANES), jnp.float32),
        grid_spec=pltpu.PrefetchScalarGridSpec(
            num_scalar_prefetch=0,
            grid=(splits, steps),
            in_specs=[
                pl.BlockSpec((B, W), in_map),
                pl.BlockSpec((B, W), in_map),
            ],
            out_specs=pl.BlockSpec((1, 1, LANES), lambda c, i: (c, 0, 0)),
            scratch_shapes=[pltpu.VMEM((8, W), jnp.float32)],
        ),
        compiler_params=pltpu.CompilerParams(
            dimension_semantics=dims,
            vmem_limit_bytes=cfg["vmem_limit"],
        ),
    )
    return jax.jit(lambda x2d, t2d: call(x2d, t2d)[:, 0, 0])


def _prepare(a):
    """Present `a` as a 2-D (M, W) slab in its NATIVE dtype, plus element count.

    Paths (no jnp.pad on any realistic ContentLoss shape):
      A/C: ndim>=2 and last dim either 128-aligned or >=128 wide -> collapse the
           leading dims only; block width equals the full last dim so ragged
           lane widths need no mask and no padding pass.
      B:   total size divisible by 128 (narrow last dims, e.g. 16x16 maps) ->
           flatten to (n/128, 128), perfectly lane-dense.
      C':  narrow ragged shapes -> collapse leading dims anyway (tiny inputs).
      D:   1-D non-128-multiple only -> flatten + <=127-element zero pad.
    """
    n = int(a.size)
    if a.ndim >= 2:
        W = int(a.shape[-1])
        if 0 < W <= MAX_WIDTH and (W % LANES == 0 or W >= LANES):
            return a.reshape(n // W, W), n
    if n % LANES == 0 and n > 0:
        return a.reshape(n // LANES, LANES), n
    if a.ndim >= 2 and 0 < int(a.shape[-1]) <= MAX_WIDTH:
        W = int(a.shape[-1])
        return a.reshape(n // W, W), n
    flat = a.reshape(-1)
    pad = (-n) % LANES
    if pad:
        flat = jnp.pad(flat, (0, pad))
    return flat.reshape(-1, LANES), n


def _mse_from_slabs(x2d, t2d, n):
    partial_fn = _build_mse_partial_fn(
        int(x2d.shape[0]), int(x2d.shape[1]), int(x2d.dtype.itemsize))
    partials = partial_fn(x2d, t2d)                 # (splits,) per-core sums
    return jnp.sum(partials) / n


def mse_loss_pallas(x, target):
    """Mean squared error over all elements, computed by the Pallas kernel."""
    assert x.shape == target.shape, "input and target must have identical shapes"
    x2d, n = _prepare(x)
    t2d, _ = _prepare(target)
    return _mse_from_slabs(x2d, t2d, n)


class ContentLoss:
    """JAX/Pallas mirror of the PyTorch ContentLoss module."""

    def __init__(self, target):
        # .detach() in PyTorch == treat as a constant; stop_gradient mirrors that.
        self.target = jax.lax.stop_gradient(target)
        # Prepare the constant target slab exactly once.
        self._t2d, self._n = _prepare(self.target)
        self.loss = None

    def __call__(self, x):
        assert x.shape == self.target.shape, "input must match target shape"
        x2d, n = _prepare(x)
        self.loss = _mse_from_slabs(x2d, self._t2d, n)
        return x  # pass-through, exactly like the PyTorch forward
        # TODO(synk): add a custom_vjp if gradients of self.loss w.r.t. x are
        # needed through the Pallas call (forward semantics do not require it).


if __name__ == "__main__":
    key = jax.random.PRNGKey(0)

    def check(shape, k, dtype=jnp.float32, rtol=1e-5, atol=1e-6):
        k_in, k_tgt = jax.random.split(k)
        x = jax.random.normal(k_in, shape, dtype=jnp.float32).astype(dtype)
        t = jax.random.normal(k_tgt, shape, dtype=jnp.float32).astype(dtype)
        module = ContentLoss(t)
        out = jax.block_until_ready(module(x))
        loss = jax.block_until_ready(module.loss)
        ref = jnp.mean((x.astype(jnp.float32) - t.astype(jnp.float32)) ** 2)
        assert out.shape == x.shape and jnp.allclose(out, x), "forward must return input"
        assert jnp.allclose(loss, ref, rtol=rtol, atol=atol), (shape, dtype, loss, ref)

    k0, k1, k2, k3, k4 = jax.random.split(key, 5)
    # Primary: small NCHW feature map (narrow last dim -> flatten path B).
    check((2, 4, 16, 16), k0)
    # Lane-aligned feature map (zero-pad-free fast path A, single block).
    check((2, 3, 8, 128), k1)
    # Non-128-multiple width (path C): ragged rows + full-width blocks, no pad.
    check((3, 299, 299), k2)
    # Multi-block grid: exercises init/accumulate/finalize and ragged last block
    # (and the 2-core split + clamped-block masking on v7x).
    check((33, 512, 256), k3)
    # bf16 input: dtype-aware tiling + in-kernel cast to f32.
    check((2, 4, 32, 128), k4, dtype=jnp.bfloat16, rtol=1e-4, atol=1e-5)

    print("KERNEL_OK")
</pallas_src>

<mosaic_0001>
module attributes {stable_mosaic.version = 11 : i64} {
  func.func @kernel(%arg0: i32, %arg1: i32, %arg2: memref<16x128xf32, #tpu.memory_space<vmem>>, %arg3: memref<16x128xf32, #tpu.memory_space<vmem>>, %arg4: memref<1x1x128xf32, #tpu.memory_space<vmem>>, %arg5: memref<8x128xf32, #tpu.memory_space<vmem>>) attributes {dimension_semantics = [#tpu.dimension_semantics<arbitrary>, #tpu.dimension_semantics<arbitrary>], iteration_bounds = array<i64: 1, 1>, scalar_prefetch = 0 : i64, scratch_operands = 1 : i64, tpu.core_type = #tpu.core_type<tc>, window_params = [{transform_indices = @transform_0, window_bounds = array<i64: 16, 128>}, {transform_indices = @transform_1, window_bounds = array<i64: 16, 128>}, {transform_indices = @transform_2, window_bounds = array<i64: 1, 1, 128>}]} {
    %c0_i32 = arith.constant 0 : i32
    %0 = arith.cmpi eq, %arg1, %c0_i32 : i32
    %1 = arith.extui %0 : i1 to i32
    %c0_i32_0 = arith.constant 0 : i32
    %2 = arith.cmpi ne, %1, %c0_i32_0 : i32
    scf.if %2 {
      %cst_10 = arith.constant 0.000000e+00 : f32
      %15 = vector.broadcast %cst_10 : f32 to vector<8x128xf32>
      %c0_11 = arith.constant 0 : index
      %c0_12 = arith.constant 0 : index
      %16 = vector.load %arg5[%c0_11, %c0_12] : memref<8x128xf32, #tpu.memory_space<vmem>>, vector<8x128xf32>
      tpu.vector_store %arg5[%c0_11, %c0_12], %15 {strides = array<i32>} : memref<8x128xf32, #tpu.memory_space<vmem>>, vector<8x128xf32>,
    } else {
    }
    %c0 = arith.constant 0 : index
    %c0_1 = arith.constant 0 : index
    %3 = vector.load %arg2[%c0, %c0_1] : memref<16x128xf32, #tpu.memory_space<vmem>>, vector<16x128xf32>
    %c0_2 = arith.constant 0 : index
    %c0_3 = arith.constant 0 : index
    %4 = vector.load %arg3[%c0_2, %c0_3] : memref<16x128xf32, #tpu.memory_space<vmem>>, vector<16x128xf32>
    %5 = arith.subf %3, %4 : vector<16x128xf32>
    %6 = arith.mulf %5, %5 : vector<16x128xf32>
    %c0_4 = arith.constant 0 : index
    %c0_5 = arith.constant 0 : index
    %7 = vector.load %arg5[%c0_4, %c0_5] : memref<8x128xf32, #tpu.memory_space<vmem>>, vector<8x128xf32>
    %8 = vector.shape_cast %6 : vector<16x128xf32> to vector<2x8x128xf32>
    %cst = arith.constant dense<0.000000e+00> : vector<8x128xf32>
    %9 = vector.multi_reduction <add>, %8, %cst [0] : vector<2x8x128xf32> to vector<8x128xf32>
    %10 = arith.addf %7, %9 : vector<8x128xf32>
    %c0_6 = arith.constant 0 : index
    %c0_7 = arith.constant 0 : index
    %11 = vector.load %arg5[%c0_6, %c0_7] : memref<8x128xf32, #tpu.memory_space<vmem>>, vector<8x128xf32>
    tpu.vector_store %arg5[%c0_6, %c0_7], %10 {strides = array<i32>} : memref<8x128xf32, #tpu.memory_space<vmem>>, vector<8x128xf32>,
    %c0_i32_8 = arith.constant 0 : i32
    %12 = arith.cmpi eq, %arg1, %c0_i32_8 : i32
    %13 = arith.extui %12 : i1 to i32
    %c0_i32_9 = arith.constant 0 : i32
    %14 = arith.cmpi ne, %13, %c0_i32_9 : i32
    scf.if %14 {
      %c0_10 = arith.constant 0 : index
      %c0_11 = arith.constant 0 : index
      %15 = vector.load %arg5[%c0_10, %c0_11] : memref<8x128xf32, #tpu.memory_space<vmem>>, vector<8x128xf32>
      %16 = vector.shape_cast %15 : vector<8x128xf32> to vector<1x8x128xf32>
      %cst_12 = arith.constant dense<0.000000e+00> : vector<1xf32>
      %17 = vector.multi_reduction <add>, %16, %cst_12 [1, 2] : vector<1x8x128xf32> to vector<1xf32>
      %18 = vector.shape_cast %17 : vector<1xf32> to vector<1x1x1xf32>
      %19 = vector.extract %18[0, 0, 0] : f32 from vector<1x1x1xf32>
      %20 = vector.broadcast %19 : f32 to vector<1x1x128xf32>
      %c0_13 = arith.constant 0 : index
      %c0_14 = arith.constant 0 : index
      %c0_15 = arith.constant 0 : index
      %21 = vector.load %arg4[%c0_13, %c0_14, %c0_15] : memref<1x1x128xf32, #tpu.memory_space<vmem>>, vector<1x1x128xf32>
      tpu.vector_store %arg4[%c0_13, %c0_14, %c0_15], %20 {strides = array<i32>} : memref<1x1x128xf32, #tpu.memory_space<vmem>>, vector<1x1x128xf32>,
    } else {
    }
    return
  }
  func.func @transform_0(%arg0: i32, %arg1: i32) -> (i32, i32) {
    %c1_i32 = arith.constant 1 : i32
    %0 = arith.muli %arg0, %c1_i32 : i32
    %1 = arith.addi %0, %arg1 : i32
    %c0_i32 = arith.constant 0 : i32
    %2 = arith.minsi %1, %c0_i32 : i32
    %c0_i32_0 = arith.constant 0 : i32
    %c0_i32_1 = arith.constant 0 : i32
    return %2, %c0_i32_0 : i32, i32
  }
  func.func @transform_1(%arg0: i32, %arg1: i32) -> (i32, i32) {
    %c1_i32 = arith.constant 1 : i32
    %0 = arith.muli %arg0, %c1_i32 : i32
    %1 = arith.addi %0, %arg1 : i32
    %c0_i32 = arith.constant 0 : i32
    %2 = arith.minsi %1, %c0_i32 : i32
    %c0_i32_0 = arith.constant 0 : i32
    %c0_i32_1 = arith.constant 0 : i32
    return %2, %c0_i32_0 : i32, i32
  }
  func.func @transform_2(%arg0: i32, %arg1: i32) -> (i32, i32, i32) {
    %c0_i32 = arith.constant 0 : i32
    %c0_i32_0 = arith.constant 0 : i32
    %c0_i32_1 = arith.constant 0 : i32
    return %arg0, %c0_i32, %c0_i32_0 : i32, i32, i32
  }
}

</mosaic_0001>

<bundles_post_ra>
// kernel: _lambda_.1
= control target key start
LH: loop header
LB: loop body
LE: loop exit
PB: predicated region body
PF: predicated region fallthrough
CT: control target
= control target key end

     0   :  { %7 = vsyncpa [#allocation4], 0  ;;  %s214_s0 = inlined_call_operand.hbm [shape: f32[16,128], index: 0, kind: input, shape index: {}]   ;;  %s215_s1 = inlined_call_operand.hbm [shape: f32[16,128], index: 1, kind: input, shape index: {}]   ;;  %s216_s2 = inlined_call_operand.hbm [shape: f32[1,1,128], index: 2, kind: output, shape index: {}]  }
   0x1   :  { %8 = vsyncpa [#allocation7], 0 }
   0x2   :  { %9 = vsyncpa [#allocation5], 0  ;;  %s185_s9 = smov [#allocation3]  }
   0x3   :  { %s21_s10 = sshll.u32 %s185_s9, 4  ;;  %s22_s10 = int_to_ptr.vmem [resolvable:$true] %s21_s10 }
   0x4   :  { %s127_s11 = scalar_lea.vmem %s22_s10, 256  ;;  %p132_p1 = scmp.lt.s32.totalorder %s22_s10, %s22_s10 }
   0x5   :  { %p128_p0 = scmp.ne.s32.totalorder %s22_s10, %s127_s11  ;;  %p133_p2 = scmp.lt.s32.totalorder %s127_s11, %s127_s11 }
   0x7   :  { %p134_p3 = por %p133_p2, %p132_p1 }
   0x9   :  { %p135_p4 = pnand %p134_p3, %p128_p0 }
   0xb   :  { %138 = shalt.err (!%p135_p4)
}
   0xc   :  { %s186_s12 = smov 128   ;;  %s187_s13 = smov 8  }
   0xd   :  { %27 = dma.hbm_to_vmem [thread:$0]  %s214_s0, 256, %s22_s10, [#allocation4], %s186_s12, %s186_s12, %s187_s13  }
   0xe   :  { %s188_s16 = smov [#allocation6]  }
   0xf   :  { %s39_s17 = sshll.u32 %s188_s16, 4  ;;  %s40_s17 = int_to_ptr.vmem [resolvable:$true] %s39_s17 }
  0x10   :  { %s147_s18 = scalar_lea.vmem %s40_s17, 256  ;;  %p152_p6 = scmp.lt.s32.totalorder %s40_s17, %s40_s17 }
  0x11   :  { %p148_p5 = scmp.ne.s32.totalorder %s40_s17, %s147_s18  ;;  %p153_p7 = scmp.lt.s32.totalorder %s147_s18, %s147_s18 }
  0x13   :  { %p154_p8 = por %p153_p7, %p152_p6 }
  0x15   :  { %p155_p9 = pnand %p154_p8, %p148_p5 }
  0x17   :  { %158 = shalt.err (!%p155_p9)
}
  0x18   :  { %45 = dma.hbm_to_vmem [thread:$0]  %s215_s1, 256, %s40_s17, [#allocation7], %s186_s12, %s186_s12, %s187_s13  }
  0x19   :  { %179 = dma.done.wait [#allocation4], 256  }
  0x1a   :  { %180 = vsyncadd [#allocation4], 4294967040 }
  0x1b   :  { %181 = dma.done.wait [#allocation7], 256  }
  0x1c   :  { %182 = vsyncadd [#allocation7], 4294967040  ;;  %v65_v0 = vld [vmem:[#allocation3] sm:$0xff]  ;;  %v66_v1 = vld [vmem:[#allocation3 + $0x8] sm:$0xff]  ;;  %s189_s0 = smov [#allocation8]  }
  0x1d   :  { %v67_v2 = vld [vmem:[#allocation6] sm:$0xff]  ;;  %v68_v3 = vld [vmem:[#allocation6 + $0x8] sm:$0xff]  ;;  %s98_s1 = sshll.u32 %s189_s0, 4  ;;  %s99_s1 = int_to_ptr.vmem [resolvable:$true] %s98_s1 }
  0x1e   :  { %v69_v4 = vsub.f32 %v65_v0, %v67_v2  ;;  %v70_v5 = vsub.f32 %v66_v1, %v68_v3  ;;  %s159_s22 = scalar_lea.vmem %s99_s1, 16  ;;  %s163_s23 = scalar_lea.vmem %s99_s1, 32 }
  0x1f   :  { %p160_p10 = scmp.ne.s32.totalorder %s99_s1, %s159_s22  ;;  %p164_p11 = scmp.lt.s32.totalorder %s99_s1, %s99_s1 }
  0x20   :  { %v71_v6 = vmul.f32 %v69_v4, %v69_v4  ;;  %v72_v7 = vmul.f32 %v70_v5, %v70_v5  ;;  %p165_p12 = scmp.lt.s32.totalorder %s163_s23, %s159_s22 }
  0x22   :  { %v74_v8 = vadd.f32 %v72_v7, %v71_v6  ;;  %p166_p13 = por %p165_p12, %p164_p11 }
  0x24   :  { %81 = vadd.xlane.f32.xlu0 %v74_v8  ;;  %p167_p0 = pnand %p166_p13, %p160_p10 }
  0xad   :  { %v82_v9 = vpop.xlane.xlu0 %81 }
  0xae   :  { %v83_v10 = vrot.slane %v82_v9, 4 }
  0xb0   :  { %v84_v11 = vadd.f32 %v83_v10, %v82_v9 }
  0xb2   :  { %v85_v12 = vrot.slane %v84_v11, 2 }
  0xb4   :  { %v86_v13 = vadd.f32 %v85_v12, %v84_v11 }
  0xb6   :  { %v87_v14 = vrot.slane %v86_v13, 1 }
  0xb8   :  { %v88_v15 = vadd.f32 %v87_v14, %v86_v13 }
  0xba   :  { %112 = vpush %v88_v15 }
  0xeb   :  { %s113_s21 = spop %112 }
  0xec   :  { %v90_v16 = vstv %s113_s21 }
  0xed   :  { %91 = vst [vmem:[#allocation8] sm:$0x1] %v90_v16 }
  0xee   :  { %170 = shalt.err (!%p167_p0)
}
  0xef   :  { %101 = dma.vmem_to_hbm [thread:$0]  %s99_s1, 16, %s216_s2, [#allocation5]  }
  0xf0   :  { %183 = dma.done.wait [#allocation5], 16  }
  0xf1   :  { %184 = vsyncadd [#allocation5], 4294967280 }
  0xf2   :  { %105 = vsyncpa [#allocation4], 1 }
  0xf3   :  { %106 = vsyncpa [#allocation7], 1 }
  0xf4   :  { %107 = vsyncpa [#allocation5], 1 }

</bundles_post_ra>
